<compile_context>
chip_gen: v7x
topology: tpu7x:2x2x1
jax: 0.10.0
libtpu: 0.0.40
codegen_flags: <defaults>
</compile_context>

<pallas_src>
import jax
import jax.numpy as jnp
import numpy as np
from jax.experimental import pallas as pl
from jax.experimental.pallas import tpu as pltpu

LANE = 128  # lane width of the padded head output


def _round_up(x, m):
    return ((x + m - 1) // m) * m


def _cdiv(a, b):
    return -(-a // b)


def mlp_rec_kernel(u_ref, m_ref,
                   w1u_ref, w1m_ref, b1_ref,
                   w2_ref, b2_ref,
                   w3_ref, b3_ref,
                   o_ref):
    # Layer 1: split-weight matmuls replace concat([u, m]) @ w1 (no lane-axis shuffle).
    h = jnp.dot(u_ref[...], w1u_ref[...], preferred_element_type=jnp.float32)
    h = h + jnp.dot(m_ref[...], w1m_ref[...], preferred_element_type=jnp.float32)
    h = jnp.maximum(h + b1_ref[...], 0.0)          # bias + ReLU in f32 (Dropout == identity)
    h = h.astype(jnp.bfloat16)

    # Layer 2: Linear + ReLU.
    h = jnp.dot(h, w2_ref[...], preferred_element_type=jnp.float32) + b2_ref[...]
    h = jnp.maximum(h, 0.0).astype(jnp.bfloat16)

    # Head: Linear into a 128-lane padded output (only lane 0 is meaningful) so the
    # store path is lane-dense / unmasked.
    out = jnp.dot(h, w3_ref[...], preferred_element_type=jnp.float32) + b3_ref[...]
    o_ref[...] = out


def mlp_recommender_forward(user_ids, movie_ids, params, *, block_b=512):
    """Forward pass matching MLPRecommender.forward (eval mode)."""
    user_tbl = params["user_embed"]      # (num_users,  E) bf16
    movie_tbl = params["movie_embed"]    # (num_movies, E) bf16
    w1, b1 = params["w1"], params["b1"]  # (2E, H1) bf16, (1, H1) f32
    w2, b2 = params["w2"], params["b2"]  # (H1, H2) bf16, (1, H2) f32
    w3, b3 = params["w3"], params["b3"]  # (H2, 1)  bf16, (1, 1)  f32

    E = user_tbl.shape[1]
    H1 = w1.shape[1]
    H2 = w2.shape[1]

    B = user_ids.shape[0]
    # Effective block size / padded batch (no divisibility requirement on B).
    if B <= block_b:
        # Split into 2 blocks when there is enough work, so v7x's 2 TCs both run.
        bb = max(8, _round_up(_cdiv(B, 2), 8)) if B >= 16 else max(8, _round_up(B, 8))
        B_pad = _round_up(B, bb)
    else:
        bb = block_b
        B_pad = _round_up(B, bb)

    pad = B_pad - B
    if pad:
        user_ids = jnp.concatenate(
            [user_ids, jnp.zeros((pad,), user_ids.dtype)])
        movie_ids = jnp.concatenate(
            [movie_ids, jnp.zeros((pad,), movie_ids.dtype)])

    # Embedding lookups (XLA glue; tables are bf16 so gathered traffic is halved).
    u = jnp.take(user_tbl, user_ids, axis=0)    # (B_pad, E) bf16
    m = jnp.take(movie_tbl, movie_ids, axis=0)  # (B_pad, E) bf16

    # Split w1 so the kernel avoids the concat; pad the head to 128 lanes.
    w1_u = w1[:E]
    w1_m = w1[E:]
    w3_pad = jnp.zeros((H2, LANE), w3.dtype).at[:, :1].set(w3)
    b3_pad = jnp.zeros((1, LANE), b3.dtype).at[:, :1].set(b3)

    grid = (B_pad // bb,)

    out = pl.pallas_call(
        mlp_rec_kernel,
        out_shape=jax.ShapeDtypeStruct((B_pad, LANE), jnp.float32),
        grid_spec=pltpu.PrefetchScalarGridSpec(
            num_scalar_prefetch=0,
            grid=grid,
            in_specs=[
                pl.BlockSpec((bb, E), lambda i: (i, 0)),       # u
                pl.BlockSpec((bb, E), lambda i: (i, 0)),       # m
                pl.BlockSpec((E, H1), lambda i: (0, 0)),       # w1_u (VMEM-resident)
                pl.BlockSpec((E, H1), lambda i: (0, 0)),       # w1_m
                pl.BlockSpec((1, H1), lambda i: (0, 0)),       # b1
                pl.BlockSpec((H1, H2), lambda i: (0, 0)),      # w2
                pl.BlockSpec((1, H2), lambda i: (0, 0)),       # b2
                pl.BlockSpec((H2, LANE), lambda i: (0, 0)),    # w3 (padded)
                pl.BlockSpec((1, LANE), lambda i: (0, 0)),     # b3 (padded)
            ],
            out_specs=pl.BlockSpec((bb, LANE), lambda i: (i, 0)),
        ),
        compiler_params=pltpu.CompilerParams(
            dimension_semantics=("parallel",)),
    )(u, m, w1_u, w1_m, b1, w2, b2, w3_pad, b3_pad)

    # PyTorch does .squeeze() on (B, 1) -> (B,); here we take lane 0 of the padded head
    # and drop the batch padding.
    return out[:B, 0]


def init_params(key, num_users, num_movies, embed_dim, hidden_dims):
    """Deterministic synthetic parameters (PyTorch-shaped, stored transposed).

    Weights/embeddings are bf16 (memory-bound traffic), biases stay f32.
    """
    assert len(hidden_dims) == 2, "kernel is specialized for two hidden layers"
    ks = jax.random.split(key, 8)
    H1, H2 = hidden_dims
    in1 = 2 * embed_dim

    def lin_init(kw, kb, fan_in, fan_out):
        bound = 1.0 / np.sqrt(fan_in)
        w = jax.random.uniform(kw, (fan_in, fan_out), jnp.float32, -bound, bound)
        b = jax.random.uniform(kb, (1, fan_out), jnp.float32, -bound, bound)
        return w.astype(jnp.bfloat16), b

    params = {
        "user_embed": jax.random.normal(
            ks[0], (num_users, embed_dim), jnp.float32).astype(jnp.bfloat16),
        "movie_embed": jax.random.normal(
            ks[1], (num_movies, embed_dim), jnp.float32).astype(jnp.bfloat16),
    }
    params["w1"], params["b1"] = lin_init(ks[2], ks[3], in1, H1)
    params["w2"], params["b2"] = lin_init(ks[4], ks[5], H1, H2)
    params["w3"], params["b3"] = lin_init(ks[6], ks[7], H2, 1)
    return params


def reference_forward(user_ids, movie_ids, params):
    """Pure-JAX reference (same bf16 params, f32 accumulation) for correctness."""
    u = jnp.take(params["user_embed"], user_ids, axis=0)
    m = jnp.take(params["movie_embed"], movie_ids, axis=0)
    x = jnp.concatenate([u, m], axis=1)
    h = jnp.dot(x, params["w1"], preferred_element_type=jnp.float32) + params["b1"]
    h = jnp.maximum(h, 0.0).astype(jnp.bfloat16)
    h = jnp.dot(h, params["w2"], preferred_element_type=jnp.float32) + params["b2"]
    h = jnp.maximum(h, 0.0).astype(jnp.bfloat16)
    out = jnp.dot(h, params["w3"], preferred_element_type=jnp.float32) + params["b3"]
    return jnp.squeeze(out, axis=-1)


if __name__ == "__main__":
    # Small, module-consistent shapes.
    num_users, num_movies = 64, 128
    embed_dim = 16
    hidden_dims = [32, 16]
    dropout = 0.2  # inference: identity (no-op)

    key = jax.random.PRNGKey(0)
    kp, ku, km = jax.random.split(key, 3)
    params = init_params(kp, num_users, num_movies, embed_dim, hidden_dims)

    # Case 1: tiny batch (single block).
    batch = 8
    user_ids = jax.random.randint(ku, (batch,), 0, num_users, dtype=jnp.int32)
    movie_ids = jax.random.randint(km, (batch,), 0, num_movies, dtype=jnp.int32)

    out = mlp_recommender_forward(user_ids, movie_ids, params)
    out = jax.block_until_ready(out)
    ref = reference_forward(user_ids, movie_ids, params)
    np.testing.assert_allclose(np.asarray(out), np.asarray(ref), rtol=1e-2, atol=1e-2)

    # Case 2: non-divisible batch with a multi-step grid (exercises padding + pipelining).
    batch2 = 300
    ku2, km2 = jax.random.split(jax.random.PRNGKey(1))
    user_ids2 = jax.random.randint(ku2, (batch2,), 0, num_users, dtype=jnp.int32)
    movie_ids2 = jax.random.randint(km2, (batch2,), 0, num_movies, dtype=jnp.int32)

    out2 = mlp_recommender_forward(user_ids2, movie_ids2, params, block_b=128)
    out2 = jax.block_until_ready(out2)
    ref2 = reference_forward(user_ids2, movie_ids2, params)
    np.testing.assert_allclose(np.asarray(out2), np.asarray(ref2), rtol=1e-2, atol=1e-2)

    print("KERNEL_OK")
</pallas_src>

<mosaic_0001>
module attributes {stable_mosaic.version = 11 : i64} {
  func.func @mlp_rec_kernel(%arg0: i32, %arg1: memref<8x16xbf16, #tpu.memory_space<vmem>>, %arg2: memref<8x16xbf16, #tpu.memory_space<vmem>>, %arg3: memref<16x32xbf16, #tpu.memory_space<vmem>>, %arg4: memref<16x32xbf16, #tpu.memory_space<vmem>>, %arg5: memref<1x32xf32, #tpu.memory_space<vmem>>, %arg6: memref<32x16xbf16, #tpu.memory_space<vmem>>, %arg7: memref<1x16xf32, #tpu.memory_space<vmem>>, %arg8: memref<16x128xbf16, #tpu.memory_space<vmem>>, %arg9: memref<1x128xf32, #tpu.memory_space<vmem>>, %arg10: memref<8x128xf32, #tpu.memory_space<vmem>>) attributes {dimension_semantics = [#tpu.dimension_semantics<parallel>], iteration_bounds = array<i64: 1>, scalar_prefetch = 0 : i64, scratch_operands = 0 : i64, tpu.core_type = #tpu.core_type<tc>, window_params = [{transform_indices = @transform_0, window_bounds = array<i64: 8, 16>}, {transform_indices = @transform_1, window_bounds = array<i64: 8, 16>}, {pipeline_mode = #tpu.pipeline_mode<synchronous>, transform_indices = @transform_2, window_bounds = array<i64: 16, 32>}, {pipeline_mode = #tpu.pipeline_mode<synchronous>, transform_indices = @transform_3, window_bounds = array<i64: 16, 32>}, {pipeline_mode = #tpu.pipeline_mode<synchronous>, transform_indices = @transform_4, window_bounds = array<i64: 1, 32>}, {pipeline_mode = #tpu.pipeline_mode<synchronous>, transform_indices = @transform_5, window_bounds = array<i64: 32, 16>}, {pipeline_mode = #tpu.pipeline_mode<synchronous>, transform_indices = @transform_6, window_bounds = array<i64: 1, 16>}, {pipeline_mode = #tpu.pipeline_mode<synchronous>, transform_indices = @transform_7, window_bounds = array<i64: 16, 128>}, {pipeline_mode = #tpu.pipeline_mode<synchronous>, transform_indices = @transform_8, window_bounds = array<i64: 1, 128>}, {transform_indices = @transform_9, window_bounds = array<i64: 8, 128>}]} {
    %c0 = arith.constant 0 : index
    %c0_0 = arith.constant 0 : index
    %0 = vector.load %arg1[%c0, %c0_0] : memref<8x16xbf16, #tpu.memory_space<vmem>>, vector<8x16xbf16>
    %c0_1 = arith.constant 0 : index
    %c0_2 = arith.constant 0 : index
    %1 = vector.load %arg3[%c0_1, %c0_2] : memref<16x32xbf16, #tpu.memory_space<vmem>>, vector<16x32xbf16>
    %cst = arith.constant dense<0.000000e+00> : vector<8x32xf32>
    %2 = tpu.matmul %0, %1, %cst {dimension_numbers = #tpu.dot_dimension_numbers<[1], [0], [0], [1], [0, 0, 1, 1], [], []>} : vector<8x16xbf16>, vector<16x32xbf16>, vector<8x32xf32> -> vector<8x32xf32>
    %c0_3 = arith.constant 0 : index
    %c0_4 = arith.constant 0 : index
    %3 = vector.load %arg2[%c0_3, %c0_4] : memref<8x16xbf16, #tpu.memory_space<vmem>>, vector<8x16xbf16>
    %c0_5 = arith.constant 0 : index
    %c0_6 = arith.constant 0 : index
    %4 = vector.load %arg4[%c0_5, %c0_6] : memref<16x32xbf16, #tpu.memory_space<vmem>>, vector<16x32xbf16>
    %cst_7 = arith.constant dense<0.000000e+00> : vector<8x32xf32>
    %5 = tpu.matmul %3, %4, %cst_7 {dimension_numbers = #tpu.dot_dimension_numbers<[1], [0], [0], [1], [0, 0, 1, 1], [], []>} : vector<8x16xbf16>, vector<16x32xbf16>, vector<8x32xf32> -> vector<8x32xf32>
    %6 = arith.addf %2, %5 : vector<8x32xf32>
    %c0_8 = arith.constant 0 : index
    %c0_9 = arith.constant 0 : index
    %7 = vector.load %arg5[%c0_8, %c0_9] : memref<1x32xf32, #tpu.memory_space<vmem>>, vector<1x32xf32>
    %8 = vector.broadcast %7 : vector<1x32xf32> to vector<8x32xf32>
    %9 = arith.addf %6, %8 : vector<8x32xf32>
    %cst_10 = arith.constant 0.000000e+00 : f32
    %10 = vector.broadcast %cst_10 : f32 to vector<8x32xf32>
    %11 = arith.maximumf %9, %10 : vector<8x32xf32>
    %12 = arith.truncf %11 : vector<8x32xf32> to vector<8x32xbf16>
    %c0_11 = arith.constant 0 : index
    %c0_12 = arith.constant 0 : index
    %13 = vector.load %arg6[%c0_11, %c0_12] : memref<32x16xbf16, #tpu.memory_space<vmem>>, vector<32x16xbf16>
    %cst_13 = arith.constant dense<0.000000e+00> : vector<8x16xf32>
    %14 = tpu.matmul %12, %13, %cst_13 {dimension_numbers = #tpu.dot_dimension_numbers<[1], [0], [0], [1], [0, 0, 1, 1], [], []>} : vector<8x32xbf16>, vector<32x16xbf16>, vector<8x16xf32> -> vector<8x16xf32>
    %c0_14 = arith.constant 0 : index
    %c0_15 = arith.constant 0 : index
    %15 = vector.load %arg7[%c0_14, %c0_15] : memref<1x16xf32, #tpu.memory_space<vmem>>, vector<1x16xf32>
    %16 = vector.broadcast %15 : vector<1x16xf32> to vector<8x16xf32>
    %17 = arith.addf %14, %16 : vector<8x16xf32>
    %cst_16 = arith.constant 0.000000e+00 : f32
    %18 = vector.broadcast %cst_16 : f32 to vector<8x16xf32>
    %19 = arith.maximumf %17, %18 : vector<8x16xf32>
    %20 = arith.truncf %19 : vector<8x16xf32> to vector<8x16xbf16>
    %c0_17 = arith.constant 0 : index
    %c0_18 = arith.constant 0 : index
    %21 = vector.load %arg8[%c0_17, %c0_18] : memref<16x128xbf16, #tpu.memory_space<vmem>>, vector<16x128xbf16>
    %cst_19 = arith.constant dense<0.000000e+00> : vector<8x128xf32>
    %22 = tpu.matmul %20, %21, %cst_19 {dimension_numbers = #tpu.dot_dimension_numbers<[1], [0], [0], [1], [0, 0, 1, 1], [], []>} : vector<8x16xbf16>, vector<16x128xbf16>, vector<8x128xf32> -> vector<8x128xf32>
    %c0_20 = arith.constant 0 : index
    %c0_21 = arith.constant 0 : index
    %23 = vector.load %arg9[%c0_20, %c0_21] : memref<1x128xf32, #tpu.memory_space<vmem>>, vector<1x128xf32>
    %24 = vector.broadcast %23 : vector<1x128xf32> to vector<8x128xf32>
    %25 = arith.addf %22, %24 : vector<8x128xf32>
    %c0_22 = arith.constant 0 : index
    %c0_23 = arith.constant 0 : index
    %26 = vector.load %arg10[%c0_22, %c0_23] : memref<8x128xf32, #tpu.memory_space<vmem>>, vector<8x128xf32>
    tpu.vector_store %arg10[%c0_22, %c0_23], %25 {strides = array<i32>} : memref<8x128xf32, #tpu.memory_space<vmem>>, vector<8x128xf32>,
    return
  }
  func.func @transform_0(%arg0: i32) -> (i32, i32) {
    %c0_i32 = arith.constant 0 : i32
    %c0_i32_0 = arith.constant 0 : i32
    return %arg0, %c0_i32 : i32, i32
  }
  func.func @transform_1(%arg0: i32) -> (i32, i32) {
    %c0_i32 = arith.constant 0 : i32
    %c0_i32_0 = arith.constant 0 : i32
    return %arg0, %c0_i32 : i32, i32
  }
  func.func @transform_2(%arg0: i32) -> (i32, i32) {
    %c0_i32 = arith.constant 0 : i32
    %c0_i32_0 = arith.constant 0 : i32
    %c0_i32_1 = arith.constant 0 : i32
    return %c0_i32, %c0_i32_0 : i32, i32
  }
  func.func @transform_3(%arg0: i32) -> (i32, i32) {
    %c0_i32 = arith.constant 0 : i32
    %c0_i32_0 = arith.constant 0 : i32
    %c0_i32_1 = arith.constant 0 : i32
    return %c0_i32, %c0_i32_0 : i32, i32
  }
  func.func @transform_4(%arg0: i32) -> (i32, i32) {
    %c0_i32 = arith.constant 0 : i32
    %c0_i32_0 = arith.constant 0 : i32
    %c0_i32_1 = arith.constant 0 : i32
    return %c0_i32, %c0_i32_0 : i32, i32
  }
  func.func @transform_5(%arg0: i32) -> (i32, i32) {
    %c0_i32 = arith.constant 0 : i32
    %c0_i32_0 = arith.constant 0 : i32
    %c0_i32_1 = arith.constant 0 : i32
    return %c0_i32, %c0_i32_0 : i32, i32
  }
  func.func @transform_6(%arg0: i32) -> (i32, i32) {
    %c0_i32 = arith.constant 0 : i32
    %c0_i32_0 = arith.constant 0 : i32
    %c0_i32_1 = arith.constant 0 : i32
    return %c0_i32, %c0_i32_0 : i32, i32
  }
  func.func @transform_7(%arg0: i32) -> (i32, i32) {
    %c0_i32 = arith.constant 0 : i32
    %c0_i32_0 = arith.constant 0 : i32
    %c0_i32_1 = arith.constant 0 : i32
    return %c0_i32, %c0_i32_0 : i32, i32
  }
  func.func @transform_8(%arg0: i32) -> (i32, i32) {
    %c0_i32 = arith.constant 0 : i32
    %c0_i32_0 = arith.constant 0 : i32
    %c0_i32_1 = arith.constant 0 : i32
    return %c0_i32, %c0_i32_0 : i32, i32
  }
  func.func @transform_9(%arg0: i32) -> (i32, i32) {
    %c0_i32 = arith.constant 0 : i32
    %c0_i32_0 = arith.constant 0 : i32
    return %arg0, %c0_i32 : i32, i32
  }
}

</mosaic_0001>

<bundles_post_ra>
// kernel: tpu_custom_call.1
= control target key start
LH: loop header
LB: loop body
LE: loop exit
PB: predicated region body
PF: predicated region fallthrough
CT: control target
= control target key end

     0   :  { %14 = vsyncpa [#allocation3], 0  ;;  %s564_s0 = inlined_call_operand.hbm [shape: bf16[8,16], index: 0, kind: input, shape index: {}]   ;;  %s565_s1 = inlined_call_operand.hbm [shape: bf16[8,16], index: 1, kind: input, shape index: {}]   ;;  %s566_s2 = inlined_call_operand.vmem [shape: bf16[16,32], index: 2, kind: input, shape index: {}]   ;;  %s567_s3 = inlined_call_operand.vmem [shape: bf16[16,32], index: 3, kind: input, shape index: {}]   ;;  %s568_s4 = inlined_call_operand.vmem [shape: f32[1,32], index: 4, kind: input, shape index: {}]   ;;  %s569_s5 = inlined_call_operand.vmem [shape: bf16[32,16], index: 5, kind: input, shape index: {}]   ;;  %s570_s6 = inlined_call_operand.vmem [shape: f32[1,16], index: 6, kind: input, shape index: {}]   ;;  %s571_s7 = inlined_call_operand.vmem [shape: bf16[16,128], index: 7, kind: input, shape index: {}]   ;;  %s572_s8 = inlined_call_operand.vmem [shape: f32[1,128], index: 8, kind: input, shape index: {}]   ;;  %s573_s9 = inlined_call_operand.hbm [shape: f32[8,128], index: 9, kind: output, shape index: {}]  }
   0x1   :  { %15 = vsyncpa [#allocation6], 0 }
   0x2   :  { %16 = vsyncpa [#allocation4], 0  ;;  %s446_s30 = smov [#allocation2]   ;;  %s447_s11 = smov [#allocation5]  }
   0x3   :  { %s23_s10 = sshll.u32 %s446_s30, 4  ;;  %s33_s12 = sshll.u32 %s447_s11, 4  ;;  %s24_s10 = int_to_ptr.vmem [resolvable:$true] %s23_s10  ;;  %s34_s12 = int_to_ptr.vmem [resolvable:$true] %s33_s12 }
   0x4   :  { %s374_s15 = scalar_lea.hbm %s564_s0, 64 }
   0x5   :  { %p375_p0 = scmp.ne.s32.totalorder %s564_s0, %s374_s15  ;;  %p378_p1 = scmp.lt.u32.totalorder %s374_s15, %s564_s0 }
   0x7   :  { %p380_p2 = pnand %p378_p1, %p375_p0 }
   0x9   :  { %383 = shalt.err (!%p380_p2)
}
   0xa   :  { %s384_s20 = scalar_lea.vmem %s24_s10, 64  ;;  %p389_p4 = scmp.lt.s32.totalorder %s24_s10, %s24_s10 }
   0xb   :  { %p385_p3 = scmp.ne.s32.totalorder %s24_s10, %s384_s20  ;;  %p390_p5 = scmp.lt.s32.totalorder %s384_s20, %s384_s20 }
   0xd   :  { %p391_p6 = por %p390_p5, %p389_p4 }
   0xf   :  { %p392_p7 = pnand %p391_p6, %p385_p3 }
  0x11   :  { %395 = shalt.err (!%p392_p7)
}
  0x12   :  { %26 = dma.hbm_to_vmem [thread:$0]  %s564_s0, 64, %s24_s10, [#allocation3]  }
  0x13   :  { %s396_s25 = scalar_lea.hbm %s565_s1, 64 }
  0x14   :  { %p397_p8 = scmp.ne.s32.totalorder %s565_s1, %s396_s25  ;;  %p400_p9 = scmp.lt.u32.totalorder %s396_s25, %s565_s1 }
  0x16   :  { %p402_p10 = pnand %p400_p9, %p397_p8 }
  0x18   :  { %405 = shalt.err (!%p402_p10)
}
  0x19   :  { %s406_s30 = scalar_lea.vmem %s34_s12, 64  ;;  %p411_p12 = scmp.lt.s32.totalorder %s34_s12, %s34_s12 }
  0x1a   :  { %p407_p11 = scmp.ne.s32.totalorder %s34_s12, %s406_s30  ;;  %p412_p13 = scmp.lt.s32.totalorder %s406_s30, %s406_s30 }
  0x1c   :  { %p413_p0 = por %p412_p13, %p411_p12 }
  0x1e   :  { %p414_p1 = pnand %p413_p0, %p407_p11 }
  0x20   :  { %417 = shalt.err (!%p414_p1)
}
  0x21   :  { %36 = dma.hbm_to_vmem [thread:$0]  %s565_s1, 64, %s34_s12, [#allocation6]  }
  0x22   :  { %440 = dma.done.wait [#allocation3], 64  }
  0x23   :  { %441 = vsyncadd [#allocation3], 4294967232 }
  0x24   :  { %442 = dma.done.wait [#allocation6], 64  }
  0x25   :  { %443 = vsyncadd [#allocation6], 4294967232  ;;  %v448_v0 = vmov 0.0   ;;  %vm449_vm0 = vmmov 0   ;;  %v369_v1 = vld [vmem:[%s567_s3] sm:$0xff]   ;;  %vm70_vm1 = vcmask 130048  }
  0x26   :  { %338 = vmatprep.subr.bf16.mxu0 %v448_v0  ;;  %344 = vmatprep.subr.bf16.mxu1 %v448_v0  ;;  %v370_v2 = vld [vmem:[%s566_s2] sm:$0xff]   ;;  %v372_v6 = vld [vmem:[%s569_s5 + $0x8] sm:$0xff]   ;;  %vm196_vm2 = vcmask 261120   ;;  %s450_s21 = smov [#allocation7]  }
  0x27   :  { %340 = vmatprep.mubr.msk.bf16.mxu0 %vm449_vm0, %v448_v0  ;;  %346 = vmatprep.mubr.msk.bf16.mxu1 %vm449_vm0, %v448_v0  ;;  %v61_v3 = vld [vmem:[#allocation5] sm:$0xf]  ;;  %v58_v4 = vld [vmem:[#allocation2] sm:$0xf]  ;;  %s307_s22 = sshll.u32 %s450_s21, 4  ;;  %s308_s22 = int_to_ptr.vmem [resolvable:$true] %s307_s22 }
  0x28   :  { %339 = vmatpush3.bf16.msra.mxu0 %v369_v1  ;;  %345 = vmatpush3.bf16.msra.mxu1 %v370_v2  ;;  %v371_v5 = vld [vmem:[%s569_s5] sm:$0xff]   ;;  %p423_p3 = scmp.lt.s32.totalorder %s308_s22, %s308_s22 }
  0x29   :  { %350 = vmatprep.subr.bf16.mxu0 %v448_v0  ;;  %358 = vmatprep.subr.bf16.mxu1 %v448_v0  ;;  %v373_v7 = vld [vmem:[%s571_s7] sm:$0xff]  }
  0x2a   :  { %v321_v10 = vld [vmem:[%s568_s4] ss:$0 sm:$0xff] }
  0x2b   :  { %341 = vmatmul.mubr.msk.bf16.vlgmr.msra.gmra.mrb[0].mxu0 %vm70_vm1, %v61_v3  ;;  %347 = vmatmul.mubr.msk.bf16.vlgmr.msra.gmra.mrb[0].mxu1 %vm70_vm1, %v58_v4  ;;  %v322_v21 = vld [vmem:[%s570_s6] ss:$0 sm:$0xff]  ;;  %s418_s6 = scalar_lea.vmem %s308_s22, 128 }
  0x2c   :  { %354 = vmatprep.mubr.msk.bf16.mxu0 %vm449_vm0, %v448_v0  ;;  %360 = vmatprep.mubr.msk.bf16.mxu1 %vm449_vm0, %v448_v0  ;;  %v326_v29 = vld [vmem:[%s572_s8] ss:$0 sm:$0xff]  ;;  %p419_p2 = scmp.ne.s32.totalorder %s308_s22, %s418_s6  ;;  %p424_p4 = scmp.lt.s32.totalorder %s418_s6, %s418_s6 }
  0x2d   :  { %351 = vmatpush3.bf16.msra.mxu0 %v371_v5  ;;  %359 = vmatpush3.bf16.msra.mxu1 %v373_v7 }
  0x2e   :  { %352 = vmatprep.subr.bf16.mxu0 %v448_v0  ;;  %p425_p5 = por %p424_p4, %p423_p3 }
  0x30   :  { %p426_p6 = pnand %p425_p5, %p419_p2 }
  0x31   :  { %353 = vmatpush3.bf16.msra.mxu0 %v372_v6 }
  0xfe   :  { %v108_v8 = vpop.f32.mrb[0].mxu0  ;;  %v157_v9 = vpop.f32.mrb[0].mxu1 }
  0xff   :  { %v342_v11 = vpop.f32.mrb[1].mxu0  ;;  %v158_v12 = vadd.f32 %v157_v9, %v108_v8  ;;  %v348_v13 = vpop.f32.mrb[1].mxu1 }
 0x100   :  { %v111_v14 = vpop.f32.mrb[2].mxu0  ;;  %v160_v15 = vpop.f32.mrb[2].mxu1 }
 0x101   :  { %v343_v16 = vpop.f32.mrb[3].mxu0  ;;  %v170_v17 = vadd.f32 %v321_v10, %v158_v12  ;;  %v349_v18 = vpop.f32.mrb[3].mxu1 }
 0x103   :  { %v171_v19 = vmax.f32 %v170_v17, 0.0 }
 0x105   :  { %v172_v20 = vpack.c.bf16 %v171_v19, %v171_v19 }
 0x107   :  { %355 = vmatmul.mubr.msk.bf16.vlgmr.msra.gmra.mrb[4].mxu0 %vm196_vm2, %v172_v20 }
 0x1da   :  { %v234_v22 = vpop.f32.mrb[4].mxu0 }
 0x1db   :  { %v235_v23 = vadd.f32 %v322_v21, %v234_v22  ;;  %v356_v24 = vpop.f32.mrb[5].mxu0 }
 0x1dc   :  { %v237_v25 = vpop.f32.mrb[6].mxu0 }
 0x1dd   :  { %v240_v26 = vmax.f32 %v235_v23, 0.0  ;;  %v357_v27 = vpop.f32.mrb[7].mxu0 }
 0x1df   :  { %v241_v28 = vpack.c.bf16 %v240_v26, %v240_v26 }
 0x1e1   :  { %361 = vmatmul.mubr.msk.bf16.vlgmr.msra.gmra.mrb[4].mxu1 %vm70_vm1, %v241_v28 }
 0x2b4   :  { %v294_v30 = vpop.f32.mrb[4].mxu1 }
 0x2b5   :  { %v295_v31 = vadd.f32 %v326_v29, %v294_v30  ;;  %v362_v32 = vpop.f32.mrb[5].mxu1 }
 0x2b6   :  { %v297_v33 = vpop.f32.mrb[6].mxu1 }
 0x2b7   :  { %300 = vst [vmem:[#allocation7] sm:$0xff] %v295_v31  ;;  %v363_v34 = vpop.f32.mrb[7].mxu1 }
 0x2b8   :  { %429 = shalt.err (!%p426_p6)
}
 0x2b9   :  { %s430_s8 = scalar_lea.hbm %s573_s9, 128 }
 0x2ba   :  { %p431_p7 = scmp.ne.s32.totalorder %s573_s9, %s430_s8  ;;  %p434_p8 = scmp.lt.u32.totalorder %s430_s8, %s573_s9 }
 0x2bc   :  { %p436_p9 = pnand %p434_p8, %p431_p7 }
 0x2be   :  { %439 = shalt.err (!%p436_p9)
}
 0x2bf   :  { %310 = dma.vmem_to_hbm [thread:$0]  %s308_s22, 128, %s573_s9, [#allocation4]  }
 0x2c0   :  { %444 = dma.done.wait [#allocation4], 128  }
 0x2c1   :  { %445 = vsyncadd [#allocation4], 4294967168 }
 0x2c2   :  { %314 = vsyncpa [#allocation3], 1 }
 0x2c3   :  { %315 = vsyncpa [#allocation6], 1 }
 0x2c4   :  { %316 = vsyncpa [#allocation4], 1 }

</bundles_post_ra>
